<compile_context>
chip_gen: v6e
topology: v6e:2x2x1
jax: 0.10.0
libtpu: 0.0.40
codegen_flags: <defaults>
</compile_context>

<pallas_src>
import functools

import jax
import jax.numpy as jnp
from jax.experimental import pallas as pl
from jax.experimental.pallas import tpu as pltpu

# ---------------------------------------------------------------------------
# NAS architecture (static / trace-time).
# ---------------------------------------------------------------------------
MAPPING = {0: "add", 1: "mul", 2: "sigmoid", 3: "tanh"}

# Flat triples (x1, x2, op) exactly like NAS[i*3:(i+1)*3] in Graph.forward.
# states[0]=student emb, states[1]=exercise emb, states[2]=concept emb.
NAS_DEC = (
    0, 1, 1,   # node0: mul(stu, exer)        -> state 3
    3, 2, 0,   # node1: add(state3, conc)     -> state 4
    4, 4, 2,   # node2: sigmoid(state4)       -> state 5
    5, 5, 3,   # node3: tanh(state5)          -> state 6  (= y, shape (B, dim))
)

LANES = 128
SUBLANES = 8


def _round_up(x, m):
    return (x + m - 1) // m * m


# ---------------------------------------------------------------------------
# Pallas kernel
# ---------------------------------------------------------------------------
def nascd_kernel(
    stu_ref, exer_ref, conc_in_ref,
    wc_ref, bc_ref,
    w1_ref, b1_ref,
    w2_ref, b2_ref,
    w3_ref, b3_ref,
    out_ref,
    *, nas_dec,
):
    # Activations arrive as bf16 tiles (halves HBM traffic); elementwise NAS
    # graph math runs in f32 on the VPU.
    stu = stu_ref[...].astype(jnp.float32)      # (TB, dim)
    exer = exer_ref[...].astype(jnp.float32)    # (TB, dim)

    # concept Linear on the MXU: (TB, Kc_pad)bf16 @ (Kc_pad, dim)bf16 -> f32 acc
    conc = (
        jnp.dot(conc_in_ref[...], wc_ref[...], preferred_element_type=jnp.float32)
        + bc_ref[...]
    )

    # Graph forward (statically unrolled over NAS triples), all f32 elementwise.
    states = [stu, exer, conc]
    for i in range(len(nas_dec) // 3):
        x1, x2, op = nas_dec[3 * i], nas_dec[3 * i + 1], nas_dec[3 * i + 2]
        name = MAPPING[op]
        if name == "add":
            y = states[x1] + states[x2]
        elif name == "mul":
            y = states[x1] * states[x2]
        elif name == "sigmoid":
            y = jax.nn.sigmoid(states[x1])
        elif name == "tanh":
            y = jnp.tanh(states[x1])
        else:
            raise ValueError(f"unsupported op {name}")
        states.append(y)
    y = states[-1]

    # prednet hot path.  PosLinear |W| is pre-applied in the wrapper; the bf16
    # weight tiles stay VMEM-resident across grid steps.  Dropout == identity.
    h1 = jax.nn.sigmoid(
        jnp.dot(y.astype(jnp.bfloat16), w1_ref[...],
                preferred_element_type=jnp.float32) + b1_ref[...]
    )
    h2 = jax.nn.sigmoid(
        jnp.dot(h1.astype(jnp.bfloat16), w2_ref[...],
                preferred_element_type=jnp.float32) + b2_ref[...]
    )
    # Degenerate 256->1 PosLinear: VPU multiply + XLU lane reduction (keeps the
    # MXU slot free for the two real matmuls).  w3_ref is a (1, 256) f32 row.
    logit = jnp.sum(h2 * w3_ref[...], axis=-1, keepdims=True) + b3_ref[...]
    out_ref[...] = jax.nn.sigmoid(logit).astype(out_ref.dtype)


# ---------------------------------------------------------------------------
# Wrapper
# ---------------------------------------------------------------------------
def nascd_forward(x_ids_stu, x_ids_exer, x_concept, params,
                  nas_dec=NAS_DEC, batch_tile=1024):
    """Full NASCDNet forward. Returns a (batch,) vector like y.view(-1)."""
    # Embedding gathers (glue, plain JAX).  Ship to the kernel in bf16.
    stu_emb = params["stu_table"][x_ids_stu].astype(jnp.bfloat16)    # (B, dim)
    exer_emb = params["exer_table"][x_ids_exer].astype(jnp.bfloat16)  # (B, dim)

    B, dim = stu_emb.shape
    n_concept = x_concept.shape[1]
    kc_pad = _round_up(n_concept, LANES)

    # Batch tiling: tile must be a multiple of 8 sublanes; pad B to whole tiles.
    tb = min(batch_tile, _round_up(B, SUBLANES))
    b_pad = _round_up(B, tb)
    pad_b = b_pad - B

    stu_p = jnp.pad(stu_emb, ((0, pad_b), (0, 0)))
    exer_p = jnp.pad(exer_emb, ((0, pad_b), (0, 0)))
    # multi-hot 0/1 values are exact in bf16; zero-pad concept cols to 128.
    conc_p = jnp.pad(x_concept.astype(jnp.bfloat16),
                     ((0, pad_b), (0, kc_pad - n_concept)))

    # Hoist the PosLinear transform (2*relu(-W)+W == |W|) and MXU dtype casts
    # out of the kernel -- done once per call, not once per grid step.
    wc = jnp.pad(params["wc"], ((0, kc_pad - n_concept), (0, 0))).astype(jnp.bfloat16)
    bc = params["bc"].astype(jnp.float32)
    w1 = jnp.abs(params["w1"]).astype(jnp.bfloat16)
    b1 = params["b1"].astype(jnp.float32)
    w2 = jnp.abs(params["w2"]).astype(jnp.bfloat16)
    b2 = params["b2"].astype(jnp.float32)
    w3 = jnp.abs(params["w3"]).reshape(1, -1).astype(jnp.float32)   # (1, len2)
    b3 = params["b3"].astype(jnp.float32)

    def act_spec(feat):
        return pl.BlockSpec((tb, feat), lambda i: (i, 0))

    def res_spec(shape):
        # Constant block index across the grid => stays VMEM-resident.
        return pl.BlockSpec(shape, lambda i: (0,) * len(shape))

    in_specs = [
        act_spec(dim),            # stu  (bf16)
        act_spec(dim),            # exer (bf16)
        act_spec(kc_pad),         # concept multi-hot (bf16)
        res_spec(wc.shape), res_spec(bc.shape),
        res_spec(w1.shape), res_spec(b1.shape),
        res_spec(w2.shape), res_spec(b2.shape),
        res_spec(w3.shape), res_spec(b3.shape),
    ]

    out = pl.pallas_call(
        functools.partial(nascd_kernel, nas_dec=nas_dec),
        out_shape=jax.ShapeDtypeStruct((b_pad, 1), jnp.float32),
        grid=(b_pad // tb,),
        in_specs=in_specs,
        out_specs=pl.BlockSpec((tb, 1), lambda i: (i, 0)),
        compiler_params=pltpu.CompilerParams(
            dimension_semantics=("parallel",),   # megacore batch split on v7x
        ),
    )(stu_p, exer_p, conc_p, wc, bc, w1, b1, w2, b2, w3, b3)

    return out.reshape(-1)[:B]  # y.view(-1), padded rows dropped


# ---------------------------------------------------------------------------
# Pure-JAX reference (for correctness check).
# ---------------------------------------------------------------------------
def nascd_ref(x_ids_stu, x_ids_exer, x_concept, params, nas_dec=NAS_DEC):
    stu = params["stu_table"][x_ids_stu].astype(jnp.float32)
    exer = params["exer_table"][x_ids_exer].astype(jnp.float32)
    conc = x_concept.astype(jnp.float32) @ params["wc"] + params["bc"]
    states = [stu, exer, conc]
    for i in range(len(nas_dec) // 3):
        x1, x2, op = nas_dec[3 * i], nas_dec[3 * i + 1], nas_dec[3 * i + 2]
        name = MAPPING[op]
        if name == "add":
            y = states[x1] + states[x2]
        elif name == "mul":
            y = states[x1] * states[x2]
        elif name == "sigmoid":
            y = jax.nn.sigmoid(states[x1])
        else:
            y = jnp.tanh(states[x1])
        states.append(y)
    y = states[-1]
    h1 = jax.nn.sigmoid(y @ jnp.abs(params["w1"]) + params["b1"])
    h2 = jax.nn.sigmoid(h1 @ jnp.abs(params["w2"]) + params["b2"])
    out = jax.nn.sigmoid(h2 @ jnp.abs(params["w3"]) + params["b3"])
    return out.reshape(-1)


# ---------------------------------------------------------------------------
# Deterministic parameter construction (synthetic init, no checkpoint).
# ---------------------------------------------------------------------------
def make_params(key, n_student, n_exercise, n_concept, dim, len1=512, len2=256):
    ks = jax.random.split(key, 10)

    def unif(k, shape, fan_in):
        bound = 1.0 / jnp.sqrt(jnp.float32(fan_in))
        return jax.random.uniform(k, shape, jnp.float32, -bound, bound)

    return {
        # nn.Embedding default init: N(0, 1)
        "stu_table": jax.random.normal(ks[0], (n_student, dim), jnp.float32),
        "exer_table": jax.random.normal(ks[1], (n_exercise, dim), jnp.float32),
        # concept Linear  (stored as (in, out))
        "wc": unif(ks[2], (n_concept, dim), n_concept),
        "bc": unif(ks[3], (1, dim), n_concept),
        # prednet PosLinear layers (stored as (in, out))
        "w1": unif(ks[4], (dim, len1), dim),
        "b1": unif(ks[5], (1, len1), dim),
        "w2": unif(ks[6], (len1, len2), len1),
        "b2": unif(ks[7], (1, len2), len1),
        "w3": unif(ks[8], (len2, 1), len2),
        "b3": unif(ks[9], (1, 1), len2),
    }


if __name__ == "__main__":
    args = dict(n_student=64, n_exercise=64, n_concept=123, dim=128)
    B = 8

    key = jax.random.PRNGKey(0)
    k_par, k_s, k_e, k_c = jax.random.split(key, 4)

    params = make_params(
        k_par, args["n_student"], args["n_exercise"], args["n_concept"], args["dim"]
    )

    # x = (student ids, exercise ids, concept multi-hot) just like get_embedding.
    x_stu = jax.random.randint(k_s, (B,), 0, args["n_student"], dtype=jnp.int32)
    x_exer = jax.random.randint(k_e, (B,), 0, args["n_exercise"], dtype=jnp.int32)
    x_conc = jax.random.bernoulli(k_c, 0.2, (B, args["n_concept"])).astype(jnp.float32)

    y = nascd_forward(x_stu, x_exer, x_conc, params)
    y = jax.block_until_ready(y)

    assert y.shape == (B,)
    assert bool(jnp.all(jnp.isfinite(y)))

    # Loose tolerance: kernel uses bf16 MXU inputs / bf16 activation DMAs with
    # f32 accumulation and f32 elementwise math.
    y_ref = nascd_ref(x_stu, x_exer, x_conc, params)
    assert float(jnp.max(jnp.abs(y - y_ref))) < 5e-2

    print("KERNEL_OK")
</pallas_src>

<mosaic_0001>
module attributes {stable_mosaic.version = 11 : i64} {
  func.func @nascd_kernel(%arg0: i32, %arg1: memref<8x128xbf16, #tpu.memory_space<vmem>>, %arg2: memref<8x128xbf16, #tpu.memory_space<vmem>>, %arg3: memref<8x128xbf16, #tpu.memory_space<vmem>>, %arg4: memref<128x128xbf16, #tpu.memory_space<vmem>>, %arg5: memref<1x128xf32, #tpu.memory_space<vmem>>, %arg6: memref<128x512xbf16, #tpu.memory_space<vmem>>, %arg7: memref<1x512xf32, #tpu.memory_space<vmem>>, %arg8: memref<512x256xbf16, #tpu.memory_space<vmem>>, %arg9: memref<1x256xf32, #tpu.memory_space<vmem>>, %arg10: memref<1x256xf32, #tpu.memory_space<vmem>>, %arg11: memref<1x1xf32, #tpu.memory_space<vmem>>, %arg12: memref<8x1xf32, #tpu.memory_space<vmem>>) attributes {dimension_semantics = [#tpu.dimension_semantics<parallel>], iteration_bounds = array<i64: 1>, scalar_prefetch = 0 : i64, scratch_operands = 0 : i64, tpu.core_type = #tpu.core_type<tc>, window_params = [{transform_indices = @transform_0, window_bounds = array<i64: 8, 128>}, {transform_indices = @transform_1, window_bounds = array<i64: 8, 128>}, {transform_indices = @transform_2, window_bounds = array<i64: 8, 128>}, {pipeline_mode = #tpu.pipeline_mode<synchronous>, transform_indices = @transform_3, window_bounds = array<i64: 128, 128>}, {pipeline_mode = #tpu.pipeline_mode<synchronous>, transform_indices = @transform_4, window_bounds = array<i64: 1, 128>}, {pipeline_mode = #tpu.pipeline_mode<synchronous>, transform_indices = @transform_5, window_bounds = array<i64: 128, 512>}, {pipeline_mode = #tpu.pipeline_mode<synchronous>, transform_indices = @transform_6, window_bounds = array<i64: 1, 512>}, {pipeline_mode = #tpu.pipeline_mode<synchronous>, transform_indices = @transform_7, window_bounds = array<i64: 512, 256>}, {pipeline_mode = #tpu.pipeline_mode<synchronous>, transform_indices = @transform_8, window_bounds = array<i64: 1, 256>}, {pipeline_mode = #tpu.pipeline_mode<synchronous>, transform_indices = @transform_9, window_bounds = array<i64: 1, 256>}, {pipeline_mode = #tpu.pipeline_mode<synchronous>, transform_indices = @transform_10, window_bounds = array<i64: 1, 1>}, {transform_indices = @transform_11, window_bounds = array<i64: 8, 1>}]} {
    %c0 = arith.constant 0 : index
    %c0_0 = arith.constant 0 : index
    %0 = vector.load %arg1[%c0, %c0_0] : memref<8x128xbf16, #tpu.memory_space<vmem>>, vector<8x128xbf16>
    %1 = arith.extf %0 : vector<8x128xbf16> to vector<8x128xf32>
    %c0_1 = arith.constant 0 : index
    %c0_2 = arith.constant 0 : index
    %2 = vector.load %arg2[%c0_1, %c0_2] : memref<8x128xbf16, #tpu.memory_space<vmem>>, vector<8x128xbf16>
    %3 = arith.extf %2 : vector<8x128xbf16> to vector<8x128xf32>
    %c0_3 = arith.constant 0 : index
    %c0_4 = arith.constant 0 : index
    %4 = vector.load %arg3[%c0_3, %c0_4] : memref<8x128xbf16, #tpu.memory_space<vmem>>, vector<8x128xbf16>
    %c0_5 = arith.constant 0 : index
    %c0_6 = arith.constant 0 : index
    %5 = vector.load %arg4[%c0_5, %c0_6] : memref<128x128xbf16, #tpu.memory_space<vmem>>, vector<128x128xbf16>
    %cst = arith.constant dense<0.000000e+00> : vector<8x128xf32>
    %6 = tpu.matmul %4, %5, %cst {dimension_numbers = #tpu.dot_dimension_numbers<[1], [0], [0], [1], [0, 0, 1, 1], [], []>} : vector<8x128xbf16>, vector<128x128xbf16>, vector<8x128xf32> -> vector<8x128xf32>
    %c0_7 = arith.constant 0 : index
    %c0_8 = arith.constant 0 : index
    %7 = vector.load %arg5[%c0_7, %c0_8] : memref<1x128xf32, #tpu.memory_space<vmem>>, vector<1x128xf32>
    %8 = vector.broadcast %7 : vector<1x128xf32> to vector<8x128xf32>
    %9 = arith.addf %6, %8 : vector<8x128xf32>
    %10 = arith.mulf %1, %3 : vector<8x128xf32>
    %11 = arith.addf %10, %9 : vector<8x128xf32>
    %12 = arith.negf %11 : vector<8x128xf32>
    %13 = math.exp %12 : vector<8x128xf32>
    %cst_9 = arith.constant 1.000000e+00 : f32
    %14 = vector.broadcast %cst_9 : f32 to vector<8x128xf32>
    %15 = arith.addf %14, %13 : vector<8x128xf32>
    %16 = arith.divf %14, %15 : vector<8x128xf32>
    %17 = math.tanh %16 : vector<8x128xf32>
    %18 = arith.truncf %17 : vector<8x128xf32> to vector<8x128xbf16>
    %c0_10 = arith.constant 0 : index
    %c0_11 = arith.constant 0 : index
    %19 = vector.load %arg6[%c0_10, %c0_11] : memref<128x512xbf16, #tpu.memory_space<vmem>>, vector<128x512xbf16>
    %cst_12 = arith.constant dense<0.000000e+00> : vector<8x512xf32>
    %20 = tpu.matmul %18, %19, %cst_12 {dimension_numbers = #tpu.dot_dimension_numbers<[1], [0], [0], [1], [0, 0, 1, 1], [], []>} : vector<8x128xbf16>, vector<128x512xbf16>, vector<8x512xf32> -> vector<8x512xf32>
    %c0_13 = arith.constant 0 : index
    %c0_14 = arith.constant 0 : index
    %21 = vector.load %arg7[%c0_13, %c0_14] : memref<1x512xf32, #tpu.memory_space<vmem>>, vector<1x512xf32>
    %22 = vector.broadcast %21 : vector<1x512xf32> to vector<8x512xf32>
    %23 = arith.addf %20, %22 : vector<8x512xf32>
    %24 = arith.negf %23 : vector<8x512xf32>
    %25 = math.exp %24 : vector<8x512xf32>
    %cst_15 = arith.constant 1.000000e+00 : f32
    %26 = vector.broadcast %cst_15 : f32 to vector<8x512xf32>
    %27 = arith.addf %26, %25 : vector<8x512xf32>
    %28 = arith.divf %26, %27 : vector<8x512xf32>
    %29 = arith.truncf %28 : vector<8x512xf32> to vector<8x512xbf16>
    %c0_16 = arith.constant 0 : index
    %c0_17 = arith.constant 0 : index
    %30 = vector.load %arg8[%c0_16, %c0_17] : memref<512x256xbf16, #tpu.memory_space<vmem>>, vector<512x256xbf16>
    %cst_18 = arith.constant dense<0.000000e+00> : vector<8x256xf32>
    %31 = tpu.matmul %29, %30, %cst_18 {dimension_numbers = #tpu.dot_dimension_numbers<[1], [0], [0], [1], [0, 0, 1, 1], [], []>} : vector<8x512xbf16>, vector<512x256xbf16>, vector<8x256xf32> -> vector<8x256xf32>
    %c0_19 = arith.constant 0 : index
    %c0_20 = arith.constant 0 : index
    %32 = vector.load %arg9[%c0_19, %c0_20] : memref<1x256xf32, #tpu.memory_space<vmem>>, vector<1x256xf32>
    %33 = vector.broadcast %32 : vector<1x256xf32> to vector<8x256xf32>
    %34 = arith.addf %31, %33 : vector<8x256xf32>
    %35 = arith.negf %34 : vector<8x256xf32>
    %36 = math.exp %35 : vector<8x256xf32>
    %cst_21 = arith.constant 1.000000e+00 : f32
    %37 = vector.broadcast %cst_21 : f32 to vector<8x256xf32>
    %38 = arith.addf %37, %36 : vector<8x256xf32>
    %39 = arith.divf %37, %38 : vector<8x256xf32>
    %c0_22 = arith.constant 0 : index
    %c0_23 = arith.constant 0 : index
    %40 = vector.load %arg10[%c0_22, %c0_23] : memref<1x256xf32, #tpu.memory_space<vmem>>, vector<1x256xf32>
    %41 = vector.broadcast %40 : vector<1x256xf32> to vector<8x256xf32>
    %42 = arith.mulf %39, %41 : vector<8x256xf32>
    %cst_24 = arith.constant dense<0.000000e+00> : vector<8xf32>
    %43 = vector.multi_reduction <add>, %42, %cst_24 [1] : vector<8x256xf32> to vector<8xf32>
    %44 = vector.shape_cast %43 : vector<8xf32> to vector<8x1xf32>
    %c0_25 = arith.constant 0 : index
    %c0_26 = arith.constant 0 : index
    %45 = vector.load %arg11[%c0_25, %c0_26] : memref<1x1xf32, #tpu.memory_space<vmem>>, vector<1x1xf32>
    %46 = vector.broadcast %45 : vector<1x1xf32> to vector<8x1xf32>
    %47 = arith.addf %44, %46 : vector<8x1xf32>
    %48 = arith.negf %47 : vector<8x1xf32>
    %49 = math.exp %48 : vector<8x1xf32>
    %cst_27 = arith.constant 1.000000e+00 : f32
    %50 = vector.broadcast %cst_27 : f32 to vector<8x1xf32>
    %51 = arith.addf %50, %49 : vector<8x1xf32>
    %52 = arith.divf %50, %51 : vector<8x1xf32>
    %c0_28 = arith.constant 0 : index
    %c0_29 = arith.constant 0 : index
    %53 = vector.load %arg12[%c0_28, %c0_29] : memref<8x1xf32, #tpu.memory_space<vmem>>, vector<8x1xf32>
    tpu.vector_store %arg12[%c0_28, %c0_29], %52 {strides = array<i32>} : memref<8x1xf32, #tpu.memory_space<vmem>>, vector<8x1xf32>,
    return
  }
  func.func @transform_0(%arg0: i32) -> (i32, i32) {
    %c0_i32 = arith.constant 0 : i32
    %c0_i32_0 = arith.constant 0 : i32
    return %arg0, %c0_i32 : i32, i32
  }
  func.func @transform_1(%arg0: i32) -> (i32, i32) {
    %c0_i32 = arith.constant 0 : i32
    %c0_i32_0 = arith.constant 0 : i32
    return %arg0, %c0_i32 : i32, i32
  }
  func.func @transform_2(%arg0: i32) -> (i32, i32) {
    %c0_i32 = arith.constant 0 : i32
    %c0_i32_0 = arith.constant 0 : i32
    return %arg0, %c0_i32 : i32, i32
  }
  func.func @transform_3(%arg0: i32) -> (i32, i32) {
    %c0_i32 = arith.constant 0 : i32
    %c0_i32_0 = arith.constant 0 : i32
    %c0_i32_1 = arith.constant 0 : i32
    return %c0_i32, %c0_i32_0 : i32, i32
  }
  func.func @transform_4(%arg0: i32) -> (i32, i32) {
    %c0_i32 = arith.constant 0 : i32
    %c0_i32_0 = arith.constant 0 : i32
    %c0_i32_1 = arith.constant 0 : i32
    return %c0_i32, %c0_i32_0 : i32, i32
  }
  func.func @transform_5(%arg0: i32) -> (i32, i32) {
    %c0_i32 = arith.constant 0 : i32
    %c0_i32_0 = arith.constant 0 : i32
    %c0_i32_1 = arith.constant 0 : i32
    return %c0_i32, %c0_i32_0 : i32, i32
  }
  func.func @transform_6(%arg0: i32) -> (i32, i32) {
    %c0_i32 = arith.constant 0 : i32
    %c0_i32_0 = arith.constant 0 : i32
    %c0_i32_1 = arith.constant 0 : i32
    return %c0_i32, %c0_i32_0 : i32, i32
  }
  func.func @transform_7(%arg0: i32) -> (i32, i32) {
    %c0_i32 = arith.constant 0 : i32
    %c0_i32_0 = arith.constant 0 : i32
    %c0_i32_1 = arith.constant 0 : i32
    return %c0_i32, %c0_i32_0 : i32, i32
  }
  func.func @transform_8(%arg0: i32) -> (i32, i32) {
    %c0_i32 = arith.constant 0 : i32
    %c0_i32_0 = arith.constant 0 : i32
    %c0_i32_1 = arith.constant 0 : i32
    return %c0_i32, %c0_i32_0 : i32, i32
  }
  func.func @transform_9(%arg0: i32) -> (i32, i32) {
    %c0_i32 = arith.constant 0 : i32
    %c0_i32_0 = arith.constant 0 : i32
    %c0_i32_1 = arith.constant 0 : i32
    return %c0_i32, %c0_i32_0 : i32, i32
  }
  func.func @transform_10(%arg0: i32) -> (i32, i32) {
    %c0_i32 = arith.constant 0 : i32
    %c0_i32_0 = arith.constant 0 : i32
    %c0_i32_1 = arith.constant 0 : i32
    return %c0_i32, %c0_i32_0 : i32, i32
  }
  func.func @transform_11(%arg0: i32) -> (i32, i32) {
    %c0_i32 = arith.constant 0 : i32
    %c0_i32_0 = arith.constant 0 : i32
    return %arg0, %c0_i32 : i32, i32
  }
}

</mosaic_0001>

<bundles_post_ra>
// kernel: tpu_custom_call.1
= control target key start
LH: loop header
LB: loop body
LE: loop exit
PB: predicated region body
PF: predicated region fallthrough
CT: control target
= control target key end

     0   :  { %s1691_s0 = inlined_call_operand.hbm [shape: bf16[8,128], index: 0, kind: input, shape index: {}]   ;;  %s1692_s1 = inlined_call_operand.hbm [shape: bf16[8,128], index: 1, kind: input, shape index: {}]   ;;  %s1693_s2 = inlined_call_operand.vmem [shape: bf16[8,128], index: 2, kind: input, shape index: {}]   ;;  %s1694_s3 = inlined_call_operand.hbm [shape: bf16[128,128], index: 3, kind: input, shape index: {}]   ;;  %s1695_s4 = inlined_call_operand.hbm [shape: f32[1,128], index: 4, kind: input, shape index: {}]   ;;  %s1696_s5 = inlined_call_operand.hbm [shape: bf16[128,512], index: 5, kind: input, shape index: {}]   ;;  %s1697_s6 = inlined_call_operand.vmem [shape: f32[1,512], index: 6, kind: input, shape index: {}]   ;;  %s1698_s7 = inlined_call_operand.hbm [shape: bf16[512,256], index: 7, kind: input, shape index: {}]   ;;  %s1699_s8 = inlined_call_operand.vmem [shape: f32[1,256], index: 8, kind: input, shape index: {}]   ;;  %s1700_s9 = inlined_call_operand.vmem [shape: f32[1,256], index: 9, kind: input, shape index: {}]   ;;  %s1701_s10 = inlined_call_operand.<no memory space> [shape: f32[1,1], index: 10, kind: input, shape index: {}]   ;;  %s1702_s11 = inlined_call_operand.vmem [shape: f32[8,1], index: 11, kind: output, shape index: {}]  }
   0x1   :  { %v16_v0 = vstv %s1701_s10 }
   0x2   :  { %17 = vst [vmem:[#allocation2] sm:$0x1] %v16_v0 }
   0x3   :  { %18 = vsyncpa [#allocation4], 0 }
   0x4   :  { %19 = vsyncpa [#allocation6], 0 }
   0x5   :  { %20 = vsyncpa [#allocation9], 0 }
   0x6   :  { %21 = vsyncpa [#allocation12], 0  ;;  %s1570_s19 = smov [#allocation5]   ;;  %s1571_s21 = smov [#allocation8]  }
   0x7   :  { %s38_s20 = sshll.u32 %s1570_s19, 4  ;;  %s62_s22 = sshll.u32 %s1571_s21, 4  ;;  %s39_s20 = int_to_ptr.vmem [resolvable:$true] %s38_s20  ;;  %s63_s22 = int_to_ptr.vmem [resolvable:$true] %s62_s22 }
   0x8   :  { %s1450_s23 = scalar_lea.vmem %s39_s20, 64  ;;  %p1455_p1 = scmp.lt.s32.totalorder %s39_s20, %s39_s20 }
   0x9   :  { %p1451_p0 = scmp.ne.s32.totalorder %s39_s20, %s1450_s23  ;;  %p1456_p2 = scmp.lt.s32.totalorder %s1450_s23, %s1450_s23 }
   0xb   :  { %p1457_p3 = por %p1456_p2, %p1455_p1 }
   0xd   :  { %p1458_p4 = pnand %p1457_p3, %p1451_p0 }
   0xf   :  { %1461 = shalt.err (!%p1458_p4)
}
  0x10   :  { %41 = dma.hbm_to_vmem [thread:$0]  %s1692_s1, 64, %s39_s20, [#allocation6]  }
  0x11   :  { %s1470_s25 = scalar_lea.vmem %s63_s22, 16  ;;  %s1474_s26 = scalar_lea.vmem %s63_s22, 32 }
  0x12   :  { %p1471_p5 = scmp.ne.s32.totalorder %s63_s22, %s1470_s25  ;;  %p1475_p6 = scmp.lt.s32.totalorder %s63_s22, %s63_s22 }
  0x13   :  { %p1476_p7 = scmp.lt.s32.totalorder %s1474_s26, %s1470_s25 }
  0x15   :  { %p1477_p8 = por %p1476_p7, %p1475_p6 }
  0x17   :  { %p1478_p9 = pnand %p1477_p8, %p1471_p5 }
  0x19   :  { %1481 = shalt.err (!%p1478_p9)
}
  0x1a   :  { %65 = dma.hbm_to_vmem [thread:$0]  %s1695_s4, 16, %s63_s22, [#allocation9]  }
  0x1b   :  { %s1572_s29 = smov [#allocation3]   ;;  %s1573_s12 = smov [#allocation7]  }
  0x1c   :  { %s28_s30 = sshll.u32 %s1572_s29, 4  ;;  %s49_s13 = sshll.u32 %s1573_s12, 4  ;;  %s29_s30 = int_to_ptr.vmem [resolvable:$true] %s28_s30  ;;  %s50_s13 = int_to_ptr.vmem [resolvable:$true] %s49_s13 }
  0x1d   :  { %s1490_s14 = scalar_lea.vmem %s29_s30, 64  ;;  %p1495_p11 = scmp.lt.s32.totalorder %s29_s30, %s29_s30 }
  0x1e   :  { %p1491_p10 = scmp.ne.s32.totalorder %s29_s30, %s1490_s14  ;;  %p1496_p12 = scmp.lt.s32.totalorder %s1490_s14, %s1490_s14 }
  0x20   :  { %p1497_p13 = por %p1496_p12, %p1495_p11 }
  0x22   :  { %p1498_p0 = pnand %p1497_p13, %p1491_p10 }
  0x24   :  { %1501 = shalt.err (!%p1498_p0)
}
  0x25   :  { %31 = dma.hbm_to_vmem [thread:$0]  %s1691_s0, 64, %s29_s30, [#allocation4]  }
  0x26   :  { %s1510_s16 = scalar_lea.vmem %s50_s13, 1024  ;;  %p1515_p2 = scmp.lt.s32.totalorder %s50_s13, %s50_s13 }
  0x27   :  { %p1511_p1 = scmp.ne.s32.totalorder %s50_s13, %s1510_s16  ;;  %p1516_p3 = scmp.lt.s32.totalorder %s1510_s16, %s1510_s16 }
  0x29   :  { %p1517_p4 = por %p1516_p3, %p1515_p2 }
  0x2b   :  { %p1518_p5 = pnand %p1517_p4, %p1511_p1 }
  0x2d   :  { %1521 = shalt.err (!%p1518_p5)
}
  0x2e   :  { %s1574_s4 = smov 64   ;;  %s1575_s17 = smov 4  }
  0x2f   :  { %55 = dma.hbm_to_vmem [thread:$0]  %s1694_s3, 1024, %s50_s13, [#allocation6], %s1574_s4, %s1574_s4, %s1575_s17  }
  0x30   :  { %s1576_s20 = smov [#allocation10]  }
  0x31   :  { %s71_s21 = sshll.u32 %s1576_s20, 4  ;;  %s72_s21 = int_to_ptr.vmem [resolvable:$true] %s71_s21 }
  0x32   :  { %s1530_s22 = scalar_lea.vmem %s72_s21, 4096  ;;  %p1535_p7 = scmp.lt.s32.totalorder %s72_s21, %s72_s21 }
  0x33   :  { %p1531_p6 = scmp.ne.s32.totalorder %s72_s21, %s1530_s22  ;;  %p1536_p8 = scmp.lt.s32.totalorder %s1530_s22, %s1530_s22 }
  0x35   :  { %p1537_p9 = por %p1536_p8, %p1535_p7 }
  0x37   :  { %p1538_p10 = pnand %p1537_p9, %p1531_p6 }
  0x39   :  { %1541 = shalt.err (!%p1538_p10)
}
  0x3a   :  { %s1577_s0 = smov 256   ;;  %s1578_s23 = smov 16  }
  0x3b   :  { %77 = dma.hbm_to_vmem [thread:$0]  %s1696_s5, 4096, %s72_s21, [#allocation9], %s1577_s0, %s1577_s0, %s1578_s23  }
  0x3c   :  { %s1579_s25 = smov [#allocation11]  }
  0x3d   :  { %s85_s26 = sshll.u32 %s1579_s25, 4  ;;  %s86_s26 = int_to_ptr.vmem [resolvable:$true] %s85_s26 }
  0x3e   :  { %s1550_s3 = scalar_lea.vmem %s86_s26, 8192  ;;  %p1555_p12 = scmp.lt.s32.totalorder %s86_s26, %s86_s26 }
  0x3f   :  { %p1551_p11 = scmp.ne.s32.totalorder %s86_s26, %s1550_s3  ;;  %p1556_p13 = scmp.lt.s32.totalorder %s1550_s3, %s1550_s3 }
  0x41   :  { %p1557_p0 = por %p1556_p13, %p1555_p12 }
  0x43   :  { %p1558_p1 = pnand %p1557_p0, %p1551_p11 }
  0x45   :  { %1561 = shalt.err (!%p1558_p1)
}
  0x46   :  { %s1580_s27 = smov 128   ;;  %s1581_s28 = smov 8  }
  0x47   :  { %91 = dma.hbm_to_vmem [thread:$0]  %s1698_s7, 8192, %s86_s26, [#allocation12], %s1580_s27, %s1580_s27, %s1581_s28  }
  0x48   :  { %1562 = dma.done.wait [#allocation4], 64  }
  0x49   :  { %1563 = vsyncadd [#allocation4], 4294967232 }
  0x4a   :  { %1564 = dma.done.wait [#allocation6], 1088  }
  0x4b   :  { %1565 = vsyncadd [#allocation6], 4294966208 }
  0x4c   :  { %1566 = dma.done.wait [#allocation9], 4112  }
  0x4d   :  { %1567 = vsyncadd [#allocation9], 4294963184 }
  0x4e   :  { %1568 = dma.done.wait [#allocation12], 8192  }
  0x4f   :  { %1569 = vsyncadd [#allocation12], 4294959104  ;;  %v1582_v1 = vmov 0.0   ;;  %vm1583_vm0 = vmmov 0   ;;  %v1256_v2 = vld [vmem:[#allocation7 + $0x38] sm:$0xff]   ;;  %v1257_v3 = vld [vmem:[#allocation7 + $0x30] sm:$0xff]  }
  0x50   :  { %1221 = vmatprep.subr.bf16.mxu0 %v1582_v1  ;;  %1237 = vmatprep.mubr.msk.bf16.mxu0 %vm1583_vm0, %v1582_v1  ;;  %v1258_v4 = vld [vmem:[#allocation7 + $0x28] sm:$0xff]   ;;  %v1259_v5 = vld [vmem:[#allocation7 + $0x20] sm:$0xff]   ;;  %v1260_v6 = vld [vmem:[#allocation7 + $0x18] sm:$0xff]   ;;  %v1584_v29 = vmov 0   ;;  %vm1088_vm1 = vcmask 7168  }
  0x51   :  { %1222 = vmatpush3.bf16.msra.mxu0 %v1256_v2  ;;  %v1261_v7 = vld [vmem:[#allocation7 + $0x10] sm:$0xff]   ;;  %v1262_v8 = vld [vmem:[#allocation7 + $0x8] sm:$0xff]   ;;  %v1263_v9 = vld [vmem:[#allocation7] sm:$0xff]   ;;  %489 = vmatprep.mubr.bf16.mxu1 %v1584_v29 }
  0x52   :  { %1223 = vmatprep.subr.bf16.mxu0 %v1582_v1  ;;  %v121_v10 = vld [vmem:[%s1693_s2] sm:$0xf]  ;;  %v1268_v12 = vld [vmem:[#allocation10 + $0xec] ss:$16 sps:$4 sm:$0xff]   ;;  %v1269_v14 = vld [vmem:[#allocation10 + $0xe0] ss:$16 sps:$4 sm:$0xff]  }
  0x53   :  { %v1264_v11 = vld [vmem:[#allocation10 + $0xe4] ss:$16 sps:$4 sm:$0xff]   ;;  %v1266_v13 = vld [vmem:[#allocation10 + $0xe8] ss:$16 sps:$4 sm:$0xff]   ;;  %v1274_v17 = vld [vmem:[#allocation10 + $0xcc] ss:$16 sps:$4 sm:$0xff]  }
  0x54   :  { %457 = vmatprep.subr.bf16.mxu1 %v1264_v11  ;;  %v1270_v15 = vld [vmem:[#allocation10 + $0xc4] ss:$16 sps:$4 sm:$0xff]   ;;  %v1272_v16 = vld [vmem:[#allocation10 + $0xc8] ss:$16 sps:$4 sm:$0xff]   ;;  %v1275_v18 = vld [vmem:[#allocation10 + $0xc0] ss:$16 sps:$4 sm:$0xff]  }
  0x55   :  { %1224 = vmatpush3.bf16.msra.mxu0 %v1257_v3  ;;  %458 = vmatpush1.bf16.msra.mxu1 %v1269_v14  ;;  %v1276_v19 = vld [vmem:[#allocation10 + $0xa4] ss:$16 sps:$4 sm:$0xff]   ;;  %v1280_v20 = vld [vmem:[#allocation10 + $0xac] ss:$16 sps:$4 sm:$0xff]   ;;  %v1278_v21 = vld [vmem:[#allocation10 + $0xa8] ss:$16 sps:$4 sm:$0xff]  }
  0x56   :  { %1225 = vmatprep.subr.bf16.mxu0 %v1582_v1  ;;  %459 = vmatprep.subr.bf16.mxu1 %v1270_v15  ;;  %v1281_v22 = vld [vmem:[#allocation10 + $0xa0] ss:$16 sps:$4 sm:$0xff]   ;;  %v1282_v23 = vld [vmem:[#allocation10 + $0x84] ss:$16 sps:$4 sm:$0xff]   ;;  %v1286_v24 = vld [vmem:[#allocation10 + $0x8c] ss:$16 sps:$4 sm:$0xff]  }
  0x57   :  { %v1284_v25 = vld [vmem:[#allocation10 + $0x88] ss:$16 sps:$4 sm:$0xff]   ;;  %v1287_v26 = vld [vmem:[#allocation10 + $0x80] ss:$16 sps:$4 sm:$0xff]   ;;  %v1288_v27 = vld [vmem:[#allocation10 + $0x64] ss:$16 sps:$4 sm:$0xff]  }
  0x58   :  { %v1292_v28 = vld [vmem:[#allocation10 + $0x6c] ss:$16 sps:$4 sm:$0xff]   ;;  %v1290_v30 = vld [vmem:[#allocation10 + $0x68] ss:$16 sps:$4 sm:$0xff]   ;;  %v1293_v31 = vld [vmem:[#allocation10 + $0x60] ss:$16 sps:$4 sm:$0xff]  }
  0x59   :  { %1226 = vmatpush3.bf16.msra.mxu0 %v1258_v4  ;;  %460 = vmatpush1.bf16.msra.mxu1 %v1275_v18  ;;  %v1294_v32 = vld [vmem:[#allocation10 + $0x44] ss:$16 sps:$4 sm:$0xff]   ;;  %v1298_v33 = vld [vmem:[#allocation10 + $0x4c] ss:$16 sps:$4 sm:$0xff]   ;;  %v1296_v34 = vld [vmem:[#allocation10 + $0x48] ss:$16 sps:$4 sm:$0xff]  }
  0x5a   :  { %1227 = vmatprep.subr.bf16.mxu0 %v1582_v1  ;;  %461 = vmatprep.subr.bf16.mxu1 %v1276_v19  ;;  %v1299_v35 = vld [vmem:[#allocation10 + $0x40] ss:$16 sps:$4 sm:$0xff]   ;;  %v1300_v36 = vld [vmem:[#allocation10 + $0x24] ss:$16 sps:$4 sm:$0xff]   ;;  %v1304_v37 = vld [vmem:[#allocation10 + $0x2c] ss:$16 sps:$4 sm:$0xff]  }
  0x5b   :  { %v1302_v38 = vld [vmem:[#allocation10 + $0x28] ss:$16 sps:$4 sm:$0xff]   ;;  %v1305_v39 = vld [vmem:[#allocation10 + $0x20] ss:$16 sps:$4 sm:$0xff]   ;;  %v1306_v40 = vld [vmem:[#allocation10 + $0x4] ss:$16 sps:$4 sm:$0xff]  }
  0x5c   :  { %v1310_v41 = vld [vmem:[#allocation10 + $0xc] ss:$16 sps:$4 sm:$0xff]   ;;  %v1308_v42 = vld [vmem:[#allocation10 + $0x8] ss:$16 sps:$4 sm:$0xff]   ;;  %v1311_v43 = vld [vmem:[#allocation10] ss:$16 sps:$4 sm:$0xff]  }
  0x5d   :  { %1228 = vmatpush3.bf16.msra.mxu0 %v1259_v5  ;;  %462 = vmatpush1.bf16.msra.mxu1 %v1281_v22  ;;  %v1314_v44 = vld [vmem:[#allocation11 + $0x74] ss:$8 sps:$4 sm:$0xff]   ;;  %v1312_v63 = vld [vmem:[#allocation11 + $0x70] ss:$8 sps:$4 sm:$0xff]   ;;  %v1320_v2 = vld [vmem:[#allocation11 + $0x64] ss:$8 sps:$4 sm:$0xff]  }
  0x5e   :  { %1229 = vmatprep.subr.bf16.mxu0 %v1582_v1  ;;  %463 = vmatprep.subr.bf16.mxu1 %v1282_v23  ;;  %v1317_v45 = vld [vmem:[#allocation11 + $0x174] ss:$8 sps:$4 sm:$0xff]   ;;  %v1315_v0 = vld [vmem:[#allocation11 + $0x170] ss:$8 sps:$4 sm:$0xff]   ;;  %v1323_v3 = vld [vmem:[#allocation11 + $0x164] ss:$8 sps:$4 sm:$0xff]  }
  0x5f   :  { %v117_v46 = vld [vmem:[#allocation3] sm:$0xf]  ;;  %v119_v47 = vld [vmem:[#allocation5] sm:$0xf]  ;;  %v1098_v50 = vld [vmem:[#allocation8] ss:$0 sm:$0xff] }
  0x60   :  { %v118_v48 = vunpack.c.l.bf16 %v117_v46  ;;  %v120_v49 = vunpack.c.l.bf16 %v119_v47  ;;  %v1318_v4 = vld [vmem:[#allocation11 + $0x60] ss:$8 sps:$4 sm:$0xff]   ;;  %v1335_v11 = vld [vmem:[#allocation11 + $0x144] ss:$8 sps:$4 sm:$0xff]   ;;  %v1338_v14 = vld [vmem:[#allocation11 + $0x34] ss:$8 sps:$4 sm:$0xff]  }
  0x61   :  { %1230 = vmatpush3.bf16.msra.mxu0 %v1260_v6  ;;  %464 = vmatpush1.bf16.msra.mxu1 %v1287_v26  ;;  %v1321_v5 = vld [vmem:[#allocation11 + $0x160] ss:$8 sps:$4 sm:$0xff]   ;;  %v1326_v6 = vld [vmem:[#allocation11 + $0x54] ss:$8 sps:$4 sm:$0xff]   ;;  %v1344_v18 = vld [vmem:[#allocation11 + $0x24] ss:$8 sps:$4 sm:$0xff]  }
  0x62   :  { %1231 = vmatprep.subr.bf16.mxu0 %v1582_v1  ;;  %465 = vmatprep.subr.bf16.mxu1 %v1288_v27  ;;  %v233_v51 = vmul.f32 %v120_v49, %v118_v48  ;;  %v1341_v15 = vld [vmem:[#allocation11 + $0x134] ss:$8 sps:$4 sm:$0xff]   ;;  %v1347_v19 = vld [vmem:[#allocation11 + $0x124] ss:$8 sps:$4 sm:$0xff]   ;;  %v1384_v48 = vld [vmem:[#allocation11 + $0xb0] ss:$8 sps:$4 sm:$0xff]  }
  0x63   :  { %v1350_v22 = vld [vmem:[#allocation11 + $0x14] ss:$8 sps:$4 sm:$0xff]   ;;  %v1356_v26 = vld [vmem:[#allocation11 + $0x4] ss:$8 sps:$4 sm:$0xff]   ;;  %v1387_v49 = vld [vmem:[#allocation11 + $0x1b0] ss:$8 sps:$4 sm:$0xff]  }
  0x64   :  { %v1353_v23 = vld [vmem:[#allocation11 + $0x114] ss:$8 sps:$4 sm:$0xff]   ;;  %v1359_v27 = vld [vmem:[#allocation11 + $0x104] ss:$8 sps:$4 sm:$0xff]  }
  0x65   :  { %1232 = vmatpush3.bf16.msra.mxu0 %v1261_v7  ;;  %466 = vmatpush1.bf16.msra.mxu1 %v1293_v31  ;;  %v1329_v7 = vld [vmem:[#allocation11 + $0x154] ss:$8 sps:$4 sm:$0xff]  }
  0x66   :  { %1233 = vmatprep.subr.bf16.mxu0 %v1582_v1  ;;  %467 = vmatprep.subr.bf16.mxu1 %v1294_v32  ;;  %v1365_v31 = vld [vmem:[#allocation11 + $0x1f4] ss:$8 sps:$4 sm:$0xff]   ;;  %v1360_v32 = vld [vmem:[#allocation11 + $0xf0] ss:$8 sps:$4 sm:$0xff]  }
  0x67   :  { %v1386_v46 = vld [vmem:[#allocation11 + $0xb4] ss:$8 sps:$4 sm:$0xff]  }
  0x68   :  { %v1389_v47 = vld [vmem:[#allocation11 + $0x1b4] ss:$8 sps:$4 sm:$0xff]  }
  0x69   :  { %1234 = vmatpush3.bf16.msra.mxu0 %v1262_v8  ;;  %468 = vmatpush1.bf16.msra.mxu1 %v1299_v35  ;;  %v1324_v8 = vld [vmem:[#allocation11 + $0x50] ss:$8 sps:$4 sm:$0xff]   ;;  %v1371_v35 = vld [vmem:[#allocation11 + $0x1e4] ss:$8 sps:$4 sm:$0xff]  }
  0x6a   :  { %1235 = vmatprep.subr.bf16.mxu0 %v1582_v1  ;;  %469 = vmatprep.subr.bf16.mxu1 %v1300_v36  ;;  %v1366_v36 = vld [vmem:[#allocation11 + $0xe0] ss:$8 sps:$4 sm:$0xff]  }
  0x6d   :  { %1236 = vmatpush3.bf16.msra.mxu0 %v1263_v9  ;;  %470 = vmatpush1.bf16.msra.mxu1 %v1305_v39  ;;  %v1327_v9 = vld [vmem:[#allocation11 + $0x150] ss:$8 sps:$4 sm:$0xff]   ;;  %v1377_v39 = vld [vmem:[#allocation11 + $0x1d4] ss:$8 sps:$4 sm:$0xff]  }
  0x6e   :  { %498 = vmatprep.subr.bf16.mxu0 %v1268_v12  ;;  %471 = vmatprep.subr.bf16.mxu1 %v1306_v40  ;;  %v1330_v12 = vld [vmem:[#allocation11 + $0x40] ss:$8 sps:$4 sm:$0xff]   ;;  %v1372_v40 = vld [vmem:[#allocation11 + $0xd0] ss:$8 sps:$4 sm:$0xff]  }
  0x70   :  { %1238 = vmatmul.mubr.bf16.vlgmr.msra.gmra.mxu0 %v121_v10  ;;  %v1332_v10 = vld [vmem:[#allocation11 + $0x44] ss:$8 sps:$4 sm:$0xff]  }
  0x71   :  { %499 = vmatpush1.bf16.msra.mxu0 %v1266_v13  ;;  %530 = vmatprep.mubr.bf16.mxu0 %v1584_v29  ;;  %v1333_v13 = vld [vmem:[#allocation11 + $0x140] ss:$8 sps:$4 sm:$0xff]  }
  0x72   :  { %500 = vmatprep.subr.bf16.mxu0 %v1274_v17  ;;  %472 = vmatpush1.bf16.msra.mxu1 %v1311_v43  ;;  %v1339_v17 = vld [vmem:[#allocation11 + $0x130] ss:$8 sps:$4 sm:$0xff]   ;;  %v1357_v29 = vld [vmem:[#allocation11 + $0x100] ss:$8 sps:$4 sm:$0xff]   ;;  %v1383_v43 = vld [vmem:[#allocation11 + $0x1c4] ss:$8 sps:$4 sm:$0xff]  }
  0x73   :  { %963 = vmatprep.subr.bf16.mxu1 %v1314_v44  ;;  %v1378_v44 = vld [vmem:[#allocation11 + $0xc0] ss:$8 sps:$4 sm:$0xff]  }
  0x75   :  { %501 = vmatpush1.bf16.msra.mxu0 %v1272_v16  ;;  %v1336_v16 = vld [vmem:[#allocation11 + $0x30] ss:$8 sps:$4 sm:$0xff]  }
  0x76   :  { %502 = vmatprep.subr.bf16.mxu0 %v1280_v20  ;;  %v1342_v20 = vld [vmem:[#allocation11 + $0x20] ss:$8 sps:$4 sm:$0xff]  }
  0x79   :  { %503 = vmatpush1.bf16.msra.mxu0 %v1278_v21  ;;  %v1345_v21 = vld [vmem:[#allocation11 + $0x120] ss:$8 sps:$4 sm:$0xff]  }
  0x7a   :  { %504 = vmatprep.subr.bf16.mxu0 %v1286_v24  ;;  %v1348_v24 = vld [vmem:[#allocation11 + $0x10] ss:$8 sps:$4 sm:$0xff]  }
  0x7d   :  { %505 = vmatpush1.bf16.msra.mxu0 %v1284_v25  ;;  %v1351_v25 = vld [vmem:[#allocation11 + $0x110] ss:$8 sps:$4 sm:$0xff]  }
  0x7e   :  { %506 = vmatprep.subr.bf16.mxu0 %v1292_v28  ;;  %v1354_v28 = vld [vmem:[#allocation11] ss:$8 sps:$4 sm:$0xff]  }
  0x81   :  { %507 = vmatpush1.bf16.msra.mxu0 %v1290_v30  ;;  %v1362_v30 = vld [vmem:[#allocation11 + $0xf4] ss:$8 sps:$4 sm:$0xff]  }
  0x82   :  { %508 = vmatprep.subr.bf16.mxu0 %v1298_v33  ;;  %v1363_v33 = vld [vmem:[#allocation11 + $0x1f0] ss:$8 sps:$4 sm:$0xff]  }
  0x85   :  { %509 = vmatpush1.bf16.msra.mxu0 %v1296_v34  ;;  %v1368_v34 = vld [vmem:[#allocation11 + $0xe4] ss:$8 sps:$4 sm:$0xff]  }
  0x86   :  { %510 = vmatprep.subr.bf16.mxu0 %v1304_v37  ;;  %v1369_v37 = vld [vmem:[#allocation11 + $0x1e0] ss:$8 sps:$4 sm:$0xff]  }
  0x89   :  { %511 = vmatpush1.bf16.msra.mxu0 %v1302_v38  ;;  %v1374_v38 = vld [vmem:[#allocation11 + $0xd4] ss:$8 sps:$4 sm:$0xff]  }
  0x8a   :  { %512 = vmatprep.subr.bf16.mxu0 %v1310_v41  ;;  %v1375_v41 = vld [vmem:[#allocation11 + $0x1d0] ss:$8 sps:$4 sm:$0xff]  }
  0x8d   :  { %513 = vmatpush1.bf16.msra.mxu0 %v1308_v42  ;;  %v1380_v42 = vld [vmem:[#allocation11 + $0xc4] ss:$8 sps:$4 sm:$0xff]  }
  0x8e   :  { %1004 = vmatprep.subr.bf16.mxu0 %v1317_v45  ;;  %v1381_v45 = vld [vmem:[#allocation11 + $0x1c0] ss:$8 sps:$4 sm:$0xff]  }
 0x130   :  { %v227_v52 = vpop.f32.mrf.mxu0 }
 0x131   :  { %v228_v53 = vadd.f32 %v1098_v50, %v227_v52  ;;  %v1392_v50 = vld [vmem:[#allocation11 + $0xa4] ss:$8 sps:$4 sm:$0xff]   ;;  %v1390_v52 = vld [vmem:[#allocation11 + $0xa0] ss:$8 sps:$4 sm:$0xff]  }
 0x132   :  { %v1239_v54 = vpop.f32.mrf.mxu0 }
 0x133   :  { %v234_v55 = vadd.f32 %v233_v51, %v228_v53  ;;  %v1395_v51 = vld [vmem:[#allocation11 + $0x1a4] ss:$8 sps:$4 sm:$0xff]   ;;  %v1393_v53 = vld [vmem:[#allocation11 + $0x1a0] ss:$8 sps:$4 sm:$0xff]   ;;  %v1398_v54 = vld [vmem:[#allocation11 + $0x94] ss:$8 sps:$4 sm:$0xff]  }
 0x134   :  { %v230_v56 = vpop.f32.mrf.mxu0 }
 0x135   :  { %v1107_v57 = vmul.f32 -1.442695, %v234_v55  ;;  %v1401_v55 = vld [vmem:[#allocation11 + $0x194] ss:$8 sps:$4 sm:$0xff]   ;;  %v1396_v56 = vld [vmem:[#allocation11 + $0x90] ss:$8 sps:$4 sm:$0xff]  }
 0x136   :  { %v1240_v58 = vpop.f32.mrf.mxu0 }
 0x137   :  { %1408 = vpow2.f32 %v1107_v57  ;;  %v1399_v57 = vld [vmem:[#allocation11 + $0x190] ss:$8 sps:$4 sm:$0xff]   ;;  %v1404_v58 = vld [vmem:[#allocation11 + $0x84] ss:$8 sps:$4 sm:$0xff]  }
 0x144   :  { %v1409_v59 = vpop.eup %1408 }
 0x145   :  { %v238_v60 = vadd.f32 1.0, %v1409_v59  ;;  %v1407_v59 = vld [vmem:[#allocation11 + $0x184] ss:$8 sps:$4 sm:$0xff]  }
 0x147   :  { %1410 = vrcp.f32 %v238_v60  ;;  %v1402_v60 = vld [vmem:[#allocation11 + $0x80] ss:$8 sps:$4 sm:$0xff]  }
 0x154   :  { %v1411_v61 = vpop.eup %1410 }
 0x155   :  { %1412 = vtanh.f32 %v1411_v61  ;;  %v1405_v61 = vld [vmem:[#allocation11 + $0x180] ss:$8 sps:$4 sm:$0xff]  }
 0x162   :  { %v1413_v62 = vpop.eup %1412 }
 0x163   :  { %v242_v1 = vpack.c.bf16 %v1413_v62, %v1413_v62  ;;  %v277_v62 = vlaneseq }
 0x165   :  { %490 = vmatmul.mubr.bf16.vlgmr.msra.gmra.mxu1 %v242_v1  ;;  %531 = vmatmul.mubr.bf16.vlgmr.msra.gmra.mxu0 %v242_v1 }
 0x166   :  { %964 = vmatpush1.bf16.msra.mxu1 %v1312_v63  ;;  %1005 = vmatpush1.bf16.msra.mxu0 %v1315_v0  ;;  %v278_v63 = vshrl.u32 %v277_v62, 7  ;;  %v1057_v62 = vld [vmem:[%s1700_s9] sm:$0x3] }
 0x167   :  { %965 = vmatprep.subr.bf16.mxu1 %v1320_v2  ;;  %1006 = vmatprep.subr.bf16.mxu0 %v1323_v3  ;;  %v275_v2 = vld [vmem:[%s1697_s6] sm:$0xf] }
 0x168   :  { %v1669_v0 = vsub.s32 0, %v278_v63  ;;  %v287_v1 = vsub.s32 2, %v278_v63  ;;  %v1674_v3 = vsub.s32 1, %v278_v63 }
 0x16a   :  { %966 = vmatpush1.bf16.msra.mxu1 %v1318_v4  ;;  %1007 = vmatpush1.bf16.msra.mxu0 %v1321_v5  ;;  %v291_v4 = vsub.s32 3, %v278_v63  ;;  %v280_v5 = vrot.slane %v275_v2, %v1669_v0  ;;  %v1062_v63 = vrot.slane %v1057_v62, %v1669_v0 }
 0x16b   :  { %967 = vmatprep.subr.bf16.mxu1 %v1326_v6  ;;  %1008 = vmatprep.subr.bf16.mxu0 %v1329_v7  ;;  %v288_v6 = vrot.slane %v275_v2, %v287_v1  ;;  %v284_v7 = vrot.slane %v275_v2, %v1674_v3  ;;  %v1066_v1 = vrot.slane %v1057_v62, %v1674_v3 }
 0x16e   :  { %968 = vmatpush1.bf16.msra.mxu1 %v1324_v8  ;;  %1009 = vmatpush1.bf16.msra.mxu0 %v1327_v9  ;;  %v292_v8 = vrot.slane %v275_v2, %v291_v4 }
 0x16f   :  { %969 = vmatprep.subr.bf16.mxu1 %v1332_v10  ;;  %1010 = vmatprep.subr.bf16.mxu0 %v1335_v11 }
 0x172   :  { %970 = vmatpush1.bf16.msra.mxu1 %v1330_v12  ;;  %1011 = vmatpush1.bf16.msra.mxu0 %v1333_v13 }
 0x173   :  { %971 = vmatprep.subr.bf16.mxu1 %v1338_v14  ;;  %1012 = vmatprep.subr.bf16.mxu0 %v1341_v15 }
 0x176   :  { %972 = vmatpush1.bf16.msra.mxu1 %v1336_v16  ;;  %1013 = vmatpush1.bf16.msra.mxu0 %v1339_v17 }
 0x177   :  { %973 = vmatprep.subr.bf16.mxu1 %v1344_v18  ;;  %1014 = vmatprep.subr.bf16.mxu0 %v1347_v19 }
 0x17a   :  { %974 = vmatpush1.bf16.msra.mxu1 %v1342_v20  ;;  %1015 = vmatpush1.bf16.msra.mxu0 %v1345_v21 }
 0x17b   :  { %975 = vmatprep.subr.bf16.mxu1 %v1350_v22  ;;  %1016 = vmatprep.subr.bf16.mxu0 %v1353_v23 }
 0x17e   :  { %976 = vmatpush1.bf16.msra.mxu1 %v1348_v24  ;;  %1017 = vmatpush1.bf16.msra.mxu0 %v1351_v25 }
 0x17f   :  { %977 = vmatprep.subr.bf16.mxu1 %v1356_v26  ;;  %1018 = vmatprep.subr.bf16.mxu0 %v1359_v27 }
 0x182   :  { %978 = vmatpush1.bf16.msra.mxu1 %v1354_v28  ;;  %1019 = vmatpush1.bf16.msra.mxu0 %v1357_v29 }
 0x183   :  { %979 = vmatprep.subr.bf16.mxu1 %v1362_v30  ;;  %1020 = vmatprep.subr.bf16.mxu0 %v1365_v31 }
 0x186   :  { %980 = vmatpush2.bf16.msra.mxu1 %v1360_v32  ;;  %1021 = vmatpush2.bf16.msra.mxu0 %v1363_v33 }
 0x187   :  { %981 = vmatprep.subr.bf16.mxu1 %v1368_v34  ;;  %1022 = vmatprep.subr.bf16.mxu0 %v1371_v35 }
 0x18a   :  { %982 = vmatpush2.bf16.msra.mxu1 %v1366_v36  ;;  %1023 = vmatpush2.bf16.msra.mxu0 %v1369_v37 }
 0x18b   :  { %983 = vmatprep.subr.bf16.mxu1 %v1374_v38  ;;  %1024 = vmatprep.subr.bf16.mxu0 %v1377_v39 }
 0x18e   :  { %984 = vmatpush2.bf16.msra.mxu1 %v1372_v40  ;;  %1025 = vmatpush2.bf16.msra.mxu0 %v1375_v41  ;;  %v631_v41 = vld [vmem:[%s1699_s8] sm:$0x3] }
 0x18f   :  { %985 = vmatprep.subr.bf16.mxu1 %v1380_v42  ;;  %1026 = vmatprep.subr.bf16.mxu0 %v1383_v43  ;;  %v636_v42 = vrot.slane %v631_v41, %v1669_v0  ;;  %v640_v43 = vrot.slane %v631_v41, %v1674_v3 }
 0x192   :  { %986 = vmatpush2.bf16.msra.mxu1 %v1378_v44  ;;  %1027 = vmatpush2.bf16.msra.mxu0 %v1381_v45 }
 0x193   :  { %987 = vmatprep.subr.bf16.mxu1 %v1386_v46  ;;  %1028 = vmatprep.subr.bf16.mxu0 %v1389_v47 }
 0x196   :  { %988 = vmatpush2.bf16.msra.mxu1 %v1384_v48  ;;  %1029 = vmatpush2.bf16.msra.mxu0 %v1387_v49 }
 0x197   :  { %989 = vmatprep.subr.bf16.mxu1 %v1392_v50  ;;  %1030 = vmatprep.subr.bf16.mxu0 %v1395_v51 }
 0x19a   :  { %990 = vmatpush2.bf16.msra.mxu1 %v1390_v52  ;;  %1031 = vmatpush2.bf16.msra.mxu0 %v1393_v53 }
 0x19b   :  { %991 = vmatprep.subr.bf16.mxu1 %v1398_v54  ;;  %1032 = vmatprep.subr.bf16.mxu0 %v1401_v55 }
 0x19e   :  { %992 = vmatpush2.bf16.msra.mxu1 %v1396_v56  ;;  %1033 = vmatpush2.bf16.msra.mxu0 %v1399_v57 }
 0x19f   :  { %993 = vmatprep.subr.bf16.mxu1 %v1404_v58  ;;  %1034 = vmatprep.subr.bf16.mxu0 %v1407_v59 }
 0x1a2   :  { %994 = vmatpush2.bf16.msra.mxu1 %v1402_v60  ;;  %1035 = vmatpush2.bf16.msra.mxu0 %v1405_v61 }
 0x225   :  { %v491_v9 = vpop.f32.mrf.mxu1  ;;  %v532_v10 = vpop.f32.mrf.mxu0 }
 0x226   :  { %v492_v11 = vadd.f32 %v491_v9, %v280_v5  ;;  %v533_v12 = vadd.f32 %v532_v10, %v288_v6 }
 0x227   :  { %v493_v13 = vpop.f32.mrf.mxu1  ;;  %v534_v14 = vpop.f32.mrf.mxu0 }
 0x228   :  { %v1140_v15 = vmul.f32 -1.442695, %v492_v11  ;;  %v1142_v16 = vmul.f32 -1.442695, %v533_v12  ;;  %v494_v17 = vadd.f32 %v493_v13, %v284_v7  ;;  %v535_v18 = vadd.f32 %v534_v14, %v292_v8  ;;  %v1210_v8 = vld [vmem:[#allocation2] ss:$0 sm:$0xff] }
 0x229   :  { %v495_v19 = vpop.f32.mrf.mxu1  ;;  %v536_v20 = vpop.f32.mrf.mxu0 }
 0x22a   :  { %1414 = vpow2.f32 %v1140_v15  ;;  %v1141_v21 = vmul.f32 -1.442695, %v494_v17  ;;  %v1143_v22 = vmul.f32 -1.442695, %v535_v18 }
 0x22b   :  { %1416 = vpow2.f32 %v1142_v16  ;;  %v496_v23 = vpop.f32.mrf.mxu1  ;;  %v537_v24 = vpop.f32.mrf.mxu0 }
 0x22c   :  { %1418 = vpow2.f32 %v1141_v21 }
 0x22d   :  { %1420 = vpow2.f32 %v1143_v22 }
 0x237   :  { %v1415_v25 = vpop.eup %1414 }
 0x238   :  { %v1417_v26 = vpop.eup %1416  ;;  %v551_v27 = vadd.f32 1.0, %v1415_v25 }
 0x239   :  { %v1419_v28 = vpop.eup %1418  ;;  %v553_v29 = vadd.f32 1.0, %v1417_v26 }
 0x23a   :  { %v1421_v30 = vpop.eup %1420  ;;  %1422 = vrcp.f32 %v551_v27  ;;  %v552_v31 = vadd.f32 1.0, %v1419_v28 }
 0x23b   :  { %1424 = vrcp.f32 %v553_v29  ;;  %v554_v32 = vadd.f32 1.0, %v1421_v30 }
 0x23c   :  { %1426 = vrcp.f32 %v552_v31 }
 0x23d   :  { %1428 = vrcp.f32 %v554_v32 }
 0x247   :  { %v1423_v33 = vpop.eup %1422 }
 0x248   :  { %v1425_v34 = vpop.eup %1424  ;;  %v563_v39 = vpack.c.bf16 %v1423_v33, %v1423_v33 }
 0x249   :  { %v1427_v35 = vpop.eup %1426  ;;  %v565_v40 = vpack.c.bf16 %v1425_v34, %v1425_v34 }
 0x24a   :  { %v1429_v36 = vpop.eup %1428  ;;  %v564_v37 = vpack.c.bf16 %v1427_v35, %v1427_v35 }
 0x24b   :  { %v566_v38 = vpack.c.bf16 %v1429_v36, %v1429_v36 }
 0x24c   :  { %995 = vmatprep.mubr.bf16.mxu1 %v564_v37 }
 0x24d   :  { %1036 = vmatprep.mubr.bf16.mxu0 %v566_v38  ;;  %996 = vmatmul.mubr.bf16.vlgmr.msra.gmra.mxu1 %v563_v39 }
 0x24e   :  { %1037 = vmatmul.mubr.bf16.vlgmr.msra.gmra.mxu0 %v565_v40 }
 0x30d   :  { %v997_v44 = vpop.f32.mrf.mxu1 }
 0x30e   :  { %v998_v45 = vadd.f32 %v997_v44, %v636_v42  ;;  %v1038_v46 = vpop.f32.mrf.mxu0 }
 0x30f   :  { %v999_v47 = vpop.f32.mrf.mxu1 }
 0x310   :  { %v1039_v48 = vadd.f32 %v1038_v46, %v998_v45  ;;  %v1000_v49 = vadd.f32 %v999_v47, %v640_v43  ;;  %v1040_v50 = vpop.f32.mrf.mxu0 }
 0x311   :  { %v1001_v51 = vpop.f32.mrf.mxu1 }
 0x312   :  { %v1208_v52 = vmul.f32 -1.442695, %v1039_v48  ;;  %v1041_v53 = vadd.f32 %v1040_v50, %v1000_v49  ;;  %v1042_v54 = vpop.f32.mrf.mxu0 }
 0x313   :  { %v1002_v55 = vpop.f32.mrf.mxu1 }
 0x314   :  { %1430 = vpow2.f32 %v1208_v52  ;;  %v1209_v56 = vmul.f32 -1.442695, %v1041_v53  ;;  %v1043_v57 = vpop.f32.mrf.mxu0 }
 0x316   :  { %1432 = vpow2.f32 %v1209_v56 }
 0x321   :  { %v1431_v58 = vpop.eup %1430 }
 0x322   :  { %v1051_v59 = vadd.f32 1.0, %v1431_v58 }
 0x323   :  { %v1433_v60 = vpop.eup %1432 }
 0x324   :  { %1434 = vrcp.f32 %v1051_v59  ;;  %v1052_v61 = vadd.f32 1.0, %v1433_v60 }
 0x326   :  { %1436 = vrcp.f32 %v1052_v61 }
 0x331   :  { %v1435_v2 = vpop.eup %1434 }
 0x332   :  { %v1069_v5 = vmul.f32 %v1435_v2, %v1062_v63 }
 0x333   :  { %v1437_v4 = vpop.eup %1436 }
 0x334   :  { %v1070_v6 = vmul.f32 %v1437_v4, %v1066_v1 }
 0x336   :  { %v1071_v7 = vadd.f32 %v1070_v6, %v1069_v5 }
 0x338   :  { %1072 = vadd.xlane.f32.xlu0 %v1071_v7 }
 0x3c1   :  { %v1073_v9 = vpop.xlane.xlu0 %1072 }
 0x3c2   :  { %v1081_v10 = vadd.f32 %v1210_v8, %v1073_v9 }
 0x3c4   :  { %v1211_v11 = vmul.f32 -1.442695, %v1081_v10 }
 0x3c6   :  { %1438 = vpow2.f32 %v1211_v11 }
 0x3d3   :  { %v1439_v12 = vpop.eup %1438 }
 0x3d4   :  { %v1085_v13 = vadd.f32 1.0, %v1439_v12 }
 0x3d6   :  { %1440 = vrcp.f32 %v1085_v13 }
 0x3e3   :  { %v1441_v14 = vpop.eup %1440 }
 0x3e4   :  { %1089 = vst.msk [vmem:[%s1702_s11] sm:$0xff] %vm1088_vm1, %v1441_v14 }
 0x3e5   :  { %1094 = vsyncpa [#allocation4], 1 }
 0x3e6   :  { %1095 = vsyncpa [#allocation6], 1 }
 0x3e7   :  { %1096 = vsyncpa [#allocation9], 1 }
 0x3e8   :  { %1097 = vsyncpa [#allocation12], 1 }

</bundles_post_ra>
